<compile_context>
chip_gen: v5e
topology: v5e:2x2
jax: 0.10.0
libtpu: 0.0.40
codegen_flags: <defaults>
</compile_context>

<pallas_src>
import jax
import jax.numpy as jnp
from jax.experimental import pallas as pl
from jax.experimental.pallas import tpu as pltpu


def _make_residual_kernel(bn: int):
    """(W + I) @ x + b per image in the block; bn is a static unroll count."""

    def kernel(w_ref, b_ref, x_ref, o_ref):
        wm = w_ref[...]                 # (C, C), residual already folded in
        bias = b_ref[...]               # (C, 1), f32
        for i in range(bn):             # static unroll over images in the block
            y = jnp.dot(wm, x_ref[i], preferred_element_type=jnp.float32)
            o_ref[i] = (y + bias).astype(o_ref.dtype)

    return kernel


def _plan_blocks(n: int, c: int, hw: int, itemsize: int, w_bytes: int):
    """Pick (bn, tile_hw).

    Per-step data tiles target <= ~4 MiB while leaving room for the resident
    (double-buffered) weight inside v7x's 64 MiB VMEM; lane dims are whole-HW
    or a multiple of 128 (no exact-divisor requirement -- grid uses cdiv); the
    grid keeps >= 2 steps along a parallel axis whenever the problem allows it
    so v7x's two TensorCores both get work.
    """
    vmem_target = 40 << 20                          # conservative (v7x: 64 MiB)
    tile_budget = min(4 << 20,
                      max(256 << 10, (vmem_target - 2 * w_bytes - (1 << 20)) // 4))

    if c * hw * itemsize <= tile_budget or hw <= 128:
        tile_hw = hw                                # whole-HW: contiguous DMAs
    else:
        tile_hw = max(128, min(hw, (tile_budget // (c * itemsize)) // 128 * 128))

    bn = 1
    if tile_hw == hw:
        # Small feature map: widen the block over batch so per-step DMAs stay
        # large (~1 MiB / step target, static-unroll cap of 8 images).
        per_img = max(1, c * hw * itemsize)
        bn = int(max(1, min(n, min(8, (1 << 20) // per_img))))
        if n >= 2 and pl.cdiv(n, bn) < 2:
            bn = pl.cdiv(n, 2)                      # keep >=2 batch steps (2 TCs)

    if pl.cdiv(n, bn) * pl.cdiv(hw, tile_hw) < 2 and hw >= 256:
        # A single-step grid would idle one TensorCore on v7x: split spatially.
        tile_hw = ((hw + 1) // 2 + 127) // 128 * 128

    return bn, tile_hw


def residual_conv1x1(x_nchw, w_oihw, b):
    """out = Conv2d(C, C, 1)(x) + x, i.e. Residual(nn.Conv2d(C, C, 1))."""
    n, c, h, w = x_nchw.shape
    hw = h * w
    x_dtype = x_nchw.dtype
    itemsize = jnp.dtype(x_dtype).itemsize

    # Fold the residual into the weight: Wx + b + x == (W + I)x + b.
    w_eff = w_oihw.reshape(c, c).astype(jnp.float32) + jnp.eye(c, dtype=jnp.float32)
    # Low-precision activations -> matching low-precision weight (single-pass
    # MXU, half the resident weight VMEM); f32 accumulation either way.
    mm_dtype = x_dtype if itemsize <= 2 else jnp.float32

    x3 = x_nchw.reshape(n, c, hw)       # pure reshape: no HBM transpose
    c_pad = c if c >= 8 else 8          # tiny C: pad channels for MXU tiles
    if c_pad != c:
        x3 = jnp.pad(x3, ((0, 0), (0, c_pad - c), (0, 0)))
        w_eff = jnp.pad(w_eff, ((0, c_pad - c), (0, c_pad - c)))
        b_pad = jnp.pad(b.astype(jnp.float32), (0, c_pad - c))
    else:
        b_pad = b.astype(jnp.float32)
    w_eff = w_eff.astype(mm_dtype)
    b_col = b_pad.reshape(c_pad, 1)

    w_itemsize = jnp.dtype(mm_dtype).itemsize
    w_bytes = c_pad * c_pad * w_itemsize
    bn, tile_hw = _plan_blocks(n, c_pad, hw, itemsize, w_bytes)
    grid = (pl.cdiv(n, bn), pl.cdiv(hw, tile_hw))

    data_spec = pl.BlockSpec((bn, c_pad, tile_hw), lambda i, j: (i, 0, j))
    in_specs = [
        pl.BlockSpec((c_pad, c_pad), lambda i, j: (0, 0)),  # weight, resident
        pl.BlockSpec((c_pad, 1), lambda i, j: (0, 0)),      # bias, resident
        data_spec,
    ]

    # VMEM budget: double-buffered in/out tiles + (double-buffered) params.
    tile_bytes = bn * c_pad * tile_hw * itemsize
    needed = 4 * tile_bytes + 2 * w_bytes + 2 * c_pad * 4 + (1 << 20)
    vmem_limit = int(min(max(needed, 16 << 20), 48 << 20))  # headroom on v7x (64 MiB)

    out3 = pl.pallas_call(
        _make_residual_kernel(bn),
        out_shape=jax.ShapeDtypeStruct((n, c_pad, hw), x_dtype),
        grid_spec=pltpu.PrefetchScalarGridSpec(
            num_scalar_prefetch=0,
            grid=grid,
            in_specs=in_specs,
            out_specs=data_spec,
        ),
        compiler_params=pltpu.CompilerParams(
            dimension_semantics=("parallel", "parallel"),
            vmem_limit_bytes=vmem_limit,
        ),
    )(w_eff, b_col, x3)

    if c_pad != c:
        out3 = out3[:, :c, :]
    return out3.reshape(n, c, h, w)


def _reference(x, w, b):
    c = x.shape[1]
    return (jnp.einsum("oc,nchw->nohw", w.reshape(c, c), x)
            + b.reshape(1, c, 1, 1) + x)


if __name__ == "__main__":
    key = jax.random.PRNGKey(0)

    # Case 1: tiny C (exercises the channel-padding path), batch-parallel grid.
    k1x, k1w, k1b, k2x, k2w, k2b = jax.random.split(key, 6)
    N, C, H, W = 2, 4, 16, 16
    x = jax.random.normal(k1x, (N, C, H, W), dtype=jnp.float32)
    bound = 1.0 / (C ** 0.5)
    w = jax.random.uniform(k1w, (C, C, 1, 1), minval=-bound, maxval=bound,
                           dtype=jnp.float32)
    b = jax.random.uniform(k1b, (C,), minval=-bound, maxval=bound,
                           dtype=jnp.float32)
    out = jax.block_until_ready(residual_conv1x1(x, w, b))
    assert out.shape == (N, C, H, W)
    assert jnp.allclose(out, _reference(x, w, b), atol=1e-5, rtol=1e-5)

    # Case 2: unpadded MXU path at a more realistic channel width.
    N2, C2, H2, W2 = 2, 32, 16, 16
    x2 = jax.random.normal(k2x, (N2, C2, H2, W2), dtype=jnp.float32)
    bound2 = 1.0 / (C2 ** 0.5)
    w2 = jax.random.uniform(k2w, (C2, C2, 1, 1), minval=-bound2, maxval=bound2,
                            dtype=jnp.float32)
    b2 = jax.random.uniform(k2b, (C2,), minval=-bound2, maxval=bound2,
                            dtype=jnp.float32)
    out2 = jax.block_until_ready(residual_conv1x1(x2, w2, b2))
    assert out2.shape == (N2, C2, H2, W2)
    assert jnp.allclose(out2, _reference(x2, w2, b2), atol=1e-5, rtol=1e-5)

    print("KERNEL_OK")
</pallas_src>

<mosaic_0001>
module attributes {stable_mosaic.version = 11 : i64} {
  func.func @kernel(%arg0: i32, %arg1: i32, %arg2: memref<8x8xf32, #tpu.memory_space<vmem>>, %arg3: memref<8x1xf32, #tpu.memory_space<vmem>>, %arg4: memref<1x8x256xf32, #tpu.memory_space<vmem>>, %arg5: memref<1x8x256xf32, #tpu.memory_space<vmem>>) attributes {dimension_semantics = [#tpu.dimension_semantics<parallel>, #tpu.dimension_semantics<parallel>], iteration_bounds = array<i64: 2, 1>, scalar_prefetch = 0 : i64, scratch_operands = 0 : i64, tpu.core_type = #tpu.core_type<tc>, window_params = [{pipeline_mode = #tpu.pipeline_mode<synchronous>, transform_indices = @transform_0, window_bounds = array<i64: 8, 8>}, {pipeline_mode = #tpu.pipeline_mode<synchronous>, transform_indices = @transform_1, window_bounds = array<i64: 8, 1>}, {transform_indices = @transform_2, window_bounds = array<i64: 1, 8, 256>}, {transform_indices = @transform_3, window_bounds = array<i64: 1, 8, 256>}]} {
    %c0 = arith.constant 0 : index
    %c0_0 = arith.constant 0 : index
    %0 = vector.load %arg2[%c0, %c0_0] : memref<8x8xf32, #tpu.memory_space<vmem>>, vector<8x8xf32>
    %c0_1 = arith.constant 0 : index
    %c0_2 = arith.constant 0 : index
    %1 = vector.load %arg3[%c0_1, %c0_2] : memref<8x1xf32, #tpu.memory_space<vmem>>, vector<8x1xf32>
    %c0_3 = arith.constant 0 : index
    %c0_4 = arith.constant 0 : index
    %c0_5 = arith.constant 0 : index
    %2 = vector.load %arg4[%c0_3, %c0_4, %c0_5] : memref<1x8x256xf32, #tpu.memory_space<vmem>>, vector<1x8x256xf32>
    %3 = vector.shape_cast %2 : vector<1x8x256xf32> to vector<8x256xf32>
    %cst = arith.constant dense<0.000000e+00> : vector<8x256xf32>
    %4 = tpu.matmul %0, %3, %cst {dimension_numbers = #tpu.dot_dimension_numbers<[1], [0], [0], [1], [0, 0, 1, 1], [], []>} : vector<8x8xf32>, vector<8x256xf32>, vector<8x256xf32> -> vector<8x256xf32>
    %5 = vector.broadcast %1 : vector<8x1xf32> to vector<8x256xf32>
    %6 = arith.addf %4, %5 : vector<8x256xf32>
    %c0_6 = arith.constant 0 : index
    %c0_7 = arith.constant 0 : index
    %c0_8 = arith.constant 0 : index
    %7 = vector.load %arg5[%c0_6, %c0_7, %c0_8] : memref<1x8x256xf32, #tpu.memory_space<vmem>>, vector<1x8x256xf32>
    %8 = vector.shape_cast %7 : vector<1x8x256xf32> to vector<8x256xf32>
    %9 = vector.shape_cast %6 : vector<8x256xf32> to vector<1x8x256xf32>
    tpu.vector_store %arg5[%c0_6, %c0_7, %c0_8], %9 {strides = array<i32>} : memref<1x8x256xf32, #tpu.memory_space<vmem>>, vector<1x8x256xf32>,
    return
  }
  func.func @transform_0(%arg0: i32, %arg1: i32) -> (i32, i32) {
    %c0_i32 = arith.constant 0 : i32
    %c0_i32_0 = arith.constant 0 : i32
    %c0_i32_1 = arith.constant 0 : i32
    return %c0_i32, %c0_i32_0 : i32, i32
  }
  func.func @transform_1(%arg0: i32, %arg1: i32) -> (i32, i32) {
    %c0_i32 = arith.constant 0 : i32
    %c0_i32_0 = arith.constant 0 : i32
    %c0_i32_1 = arith.constant 0 : i32
    return %c0_i32, %c0_i32_0 : i32, i32
  }
  func.func @transform_2(%arg0: i32, %arg1: i32) -> (i32, i32, i32) {
    %c0_i32 = arith.constant 0 : i32
    %c0_i32_0 = arith.constant 0 : i32
    return %arg0, %c0_i32, %arg1 : i32, i32, i32
  }
  func.func @transform_3(%arg0: i32, %arg1: i32) -> (i32, i32, i32) {
    %c0_i32 = arith.constant 0 : i32
    %c0_i32_0 = arith.constant 0 : i32
    return %arg0, %c0_i32, %arg1 : i32, i32, i32
  }
}

</mosaic_0001>

<bundles_post_ra>
// kernel: tpu_custom_call.1
= control target key start
LH: loop header
LB: loop body
LE: loop exit
PB: predicated region body
PF: predicated region fallthrough
CT: control target
= control target key end

     0   :  { %8 = vsyncpa [#allocation3], 0  ;;  %s711_s0 = inlined_call_operand.vmem [shape: f32[8,8], index: 0, kind: input, shape index: {}]   ;;  %s712_s1 = inlined_call_operand.vmem [shape: f32[8,1], index: 1, kind: input, shape index: {}]   ;;  %s713_s2 = inlined_call_operand.hbm [shape: f32[2,8,256], index: 2, kind: input, shape index: {}]   ;;  %s714_s3 = inlined_call_operand.hbm [shape: f32[2,8,256], index: 3, kind: output, shape index: {}]  }
   0x1   :  { %10 = vsyncpa [#allocation3 + $0x1], 0 }
   0x2   :  { %11 = vsyncpa [#allocation4], 0 }
   0x3   :  { %13 = vsyncpa [#allocation4 + $0x1], 0  ;;  %s585_s12 = smov 0   ;;  %s587_s13 = smov 0  }
   0x4   :  { %s589_s14 = smov 0   ;;  %s591_s15 = smov 0  }
   0x5   :  { %s593_s16 = smov 0   ;;  %s595_s17 = smov 0  }
   0x6 LB: > { %s367_s18 = sadd.s32 4294967295, %s562_s17   ;;  %s368_s19 = sadd.s32 4294967294, %s562_s17   ;;  %s562_s17 = sphi %s595_s17, %s19_s17   ;;  %s558_s16 = sphi %s593_s16, %s723_s16   ;;  %s554_s15 = sphi %s591_s15, %s722_s15   ;;  %s550_s14 = sphi %s589_s14, %s721_s14   ;;  %s546_s13 = sphi %s587_s13, %s720_s13   ;;  %s542_s12 = sphi %s585_s12, %s719_s12  }
   0x7   : > { %s31_s20 = sadd.s32 1, %s558_s16  ;;  %s82_s21 = sadd.s32 1, %s550_s14 }
   0x8   : > { %p33_p0 = scmp.ge.s32.totalorder %s31_s20, 2  ;;  %p89_p1 = scmp.ne.s32.totalorder %s550_s14, %s546_s13 }
   0x9   : > { %p90_p2 = scmp.eq.s32.totalorder %s562_s17, 0  ;;  %p95_p3 = scmp.ne.s32.totalorder %s546_s13, %s542_s12 }
   0xa   : > { %s725_s20 = smov (%p33_p0, %s31_s20), 0  ;;  %p96_p5 = scmp.eq.s32.totalorder %s367_s18, 0 }
   0xb   : > { %p626_p4 = por %p90_p2, %p89_p1  ;;  %s77_s23 = ssub.s32 %s558_s16, %s725_s20 }
   0xc   : > { %p121_p6 = scmp.eq.s32.totalorder %s367_s18, 1  ;;  %p80_p7 = scmp.eq.s32.totalorder %s77_s23, 0 }
   0xd   : > { %p632_p8 = por %p96_p5, %p95_p3  ;;  %p127_p10 = scmp.eq.s32.totalorder %s368_s19, 1 }
   0xe   : > { %p636_p9 = por %p121_p6, %p89_p1  ;;  %p370_p12 = scmp.ge.s32.totalorder %s562_s17, 2 }
   0xf   : > { %s641_s26 = scalar_select %p80_p7, %s550_s14, %s82_s21  }
  0x10   : > { %p643_p11 = por %p127_p10, %p95_p3  ;;  %p398_p13 = scmp.lt.s32.totalorder %s562_s17, 2 }
  0x11   : > { %s153_s28 = sand.u32 1, %s550_s14   ;;  %s384_s30 = sshll.u32 %s558_s16, 4 }
  0x12   : > { %s371_s29 = sshll.u32 %s153_s28, 4  ;;  %s164_s6 = scalar_lea.hbm %s713_s2, %s384_s30 }
  0x13   : > { %s157_s7 = scalar_lea.vmem [#allocation2], %s371_s29  ;;  %s166_s9 = sshll.u32 %s164_s6, 4  ;;  %s167_s9 = int_to_ptr.hbm [resolvable:$true] %s166_s9 }
  0x14   : > { %s168_s8 = sshll.u32 %s157_s7, 4  ;;  %p391_p0 = pnand %p398_p13, %p626_p4  ;;  %s169_s8 = int_to_ptr.vmem [resolvable:$true] %s168_s8 }
  0x15   : > { %p374_p1 = scmp.ge.s32.totalorder %s562_s17, 1  ;;  %p173_p2 = scmp.lt.s32.totalorder %s562_s17, 3 }
  0x16   : > { %s154_s10 = scalar_lea.sflag [#allocation3], %s153_s28 }
  0x17   : > { %393 = dma.hbm_to_vmem [thread:$0]  (!%p391_p0), %s167_s9, 256, %s169_s8, %s154_s10  }
  0x18   : > { %p174_p3 = pnand %p374_p1, %p173_p2 }
  0x19   : > { %s659_s11 = sand.u32 (!%p174_p3), 1, %s546_s13  }
  0x1a   : > { %177 = sbr.rel (%p174_p3) target bundleno = 166 (0xa6), region = 32  ;;  %s375_s18 = sshll.u32 (!%p174_p3), %s659_s11, 4 }
  0x1b   : > { %s180_s19 = scalar_lea.sflag (!%p174_p3), [#allocation3], %s659_s11  ;;  %s183_s21 = scalar_lea.vmem (!%p174_p3), [#allocation2], %s375_s18 }
  0x1f   : > { %533 = dma.done.wait (%p632_p8), %s180_s19, 256  }
  0x20   : > { %535 = vsyncadd (%p632_p8), %s180_s19, 4294967040  ;;  %v564_v0 = vmov 0   ;;  %vm218_vm0 = vcmask 64512   ;;  %v211_v1 = vld [vmem:[%s183_s21] sm:$0xff]  ;;  %v212_v2 = vld [vmem:[%s183_s21 + $0x8] sm:$0xff]  ;;  %s385_s24 = sshll.u32 %s554_s15, 4 }
  0x21   : > { %449 = vset.pattern.permute.xlu0 %v564_v0  ;;  %v209_v3 = vld [vmem:[%s711_s0] sm:$0xff]  ;;  %237 = vmatpush.msra.mxu0 %v211_v1  ;;  %s278_s5 = scalar_lea.hbm %s714_s3, %s385_s24  ;;  %s206_s6 = scalar_lea.vmem [#allocation5], %s375_s18 }
  0x22   : > { %257 = vmatpush.msra.mxu1 %v212_v2  ;;  %v210_v4 = vld [vmem:[%s712_s1] sm:$0xff]  ;;  %377 = vmatmul.msk.f32.vlgmr.msra.gmra.mxu0 %vm218_vm0, %v209_v3  ;;  %s280_s7 = sshll.u32 %s206_s6, 4  ;;  %s282_s8 = sshll.u32 %s278_s5, 4  ;;  %s281_s7 = int_to_ptr.vmem [resolvable:$true] %s280_s7  ;;  %s283_s8 = int_to_ptr.hbm [resolvable:$true] %s282_s8 }
  0x23   : > { %378 = vmatmul.msk.f32.vlgmr.msra.gmra.mxu1 %vm218_vm0, %v209_v3  ;;  %215 = vperm.xlu0 %449, %v210_v4   ;;  %s265_s9 = scalar_lea.sflag [#allocation4], %s659_s11  ;;  %s494_s10 = sshra.s32 %s283_s8, 4  ;;  %s495_s10 = int_to_ptr.hbm [resolvable:$true] %s494_s10 }
  0x24   : > { %s496_s15 = scalar_lea.hbm %s495_s10, 16  ;;  %s500_s21 = scalar_lea.hbm %s714_s3, 32 }
  0x25   : > { %p497_p4 = scmp.ne.s32.totalorder %s495_s10, %s496_s15  ;;  %p501_p7 = scmp.lt.s32.totalorder %s495_s10, %s714_s3 }
  0x26   : > { %p502_p8 = scmp.lt.s32.totalorder %s500_s21, %s496_s15 }
  0x27   : > { %p498_p5 = pnand %p497_p4, %p636_p9 }
  0x28   : > { %p503_p10 = por %p502_p8, %p501_p7 }
  0x29   : > { %p499_p6 = pneg %p498_p5 }
  0x2b   : > { %p504_p13 = pnand %p503_p10, %p499_p6 }
  0x95   : > { %v216_v5 = vpop.permute.xlu0 %215 }
  0x9f   : > { %v239_v6 = vpop.f32.mrf.mxu0 }
  0xa0   : > { %v259_v7 = vpop.f32.mrf.mxu1  ;;  %v240_v8 = vadd.f32 %v239_v6, %v216_v5 }
  0xa1   : > { %v260_v9 = vadd.f32 %v259_v7, %v216_v5 }
  0xa2   : > { %262 = vst [vmem:[%s206_s6] sm:$0xff] %v240_v8 }
  0xa3   : > { %263 = vst [vmem:[%s206_s6 + $0x8] sm:$0xff] %v260_v9 }
  0xa4   : > { %507 = shalt.err (!%p504_p13)
}
  0xa5   : > { %388 = dma.vmem_to_hbm [thread:$0]  (%p636_p9), %s281_s7, 256, %s283_s8, %s265_s9  }
  0xa6 PF: > { %s294_s11 = sand.u32 1, %s542_s12   ;;  %p395_p0 = pnand %p370_p12, %p643_p11 }
  0xa7   : > { %s295_s28 = scalar_lea.sflag [#allocation4], %s294_s11 }
  0xa8   : > { %p396_p1 = pneg %p395_p0 }
  0xaa   : > { %537 = dma.done.wait (%p396_p1), %s295_s28, 256  }
  0xab   : > { %539 = vsyncadd (%p396_p1), %s295_s28, 4294967040  ;;  %s19_s17 = sadd.s32 1, %s562_s17   ;;  %s719_s12 = smov %s546_s13 }
  0xac   : > { %p16_p2 = scmp.ge.s32.totalorder %s19_s17, 4   ;;  %s720_s13 = smov %s550_s14 }
  0xad   : > { %s721_s14 = smov %s641_s26  ;;  %s722_s15 = smov %s558_s16 }
  0xae   : > { %s723_s16 = smov %s725_s20  ;;  %18 = sbr.rel (!%p16_p2) target bundleno = 6 (0x6), region = 77 }
  0xb3   :  { %301 = vsyncpa [#allocation3], 1 }
  0xb4   :  { %303 = vsyncpa [#allocation3 + $0x1], 1 }
  0xb5   :  { %304 = vsyncpa [#allocation4], 1 }
  0xb6   :  { %306 = vsyncpa [#allocation4 + $0x1], 1 }

</bundles_post_ra>
